<compile_context>
chip_gen: v6e
topology: v6e:2x2x1
jax: 0.10.0
libtpu: 0.0.40
codegen_flags: <defaults>
</compile_context>

<pallas_src>
import jax
import jax.numpy as jnp
from jax.experimental import pallas as pl
from jax.experimental.pallas import tpu as pltpu


def _round_up(x, m):
    return ((x + m - 1) // m) * m


def _sigmoid(z):
    # sigmoid(z) == 0.5 * (tanh(z/2) + 1): stable, no VALU divide, tanh goes to the EUP.
    return 0.5 * (jnp.tanh(0.5 * z) + 1.0)


def ffnn_kernel(x_ref, w1_ref, w2_ref, o_ref):
    # z = X_tile @ W1   (MXU, f32 accumulate)
    z = jnp.dot(x_ref[...], w1_ref[...], preferred_element_type=jnp.float32)
    # z2 = sigmoid(z)
    z2 = _sigmoid(z)
    # z3 = z2 @ W2
    z3 = jnp.dot(z2, w2_ref[...], preferred_element_type=jnp.float32)
    # o = sigmoid(z3)
    o_ref[...] = _sigmoid(z3).astype(o_ref.dtype)


def pad_ffnn_weights(w1, w2):
    """Pad weights to (8,128)-aligned tiles ONCE (outside the per-call path).

    Zero padding is exact: padded hidden columns give sigmoid(0)=0.5 but multiply
    zero rows of W2; padded input rows of W1 multiply zero-padded X columns.
    """
    in_f, hidden = w1.shape
    hidden2, out_f = w2.shape
    assert hidden == hidden2
    ip = _round_up(in_f, 128)
    hp = _round_up(hidden, 128)
    op = _round_up(out_f, 128)
    w1_p = jnp.pad(w1.astype(jnp.float32), ((0, ip - in_f), (0, hp - hidden)))
    w2_p = jnp.pad(w2.astype(jnp.float32), ((0, hp - hidden), (0, op - out_f)))
    return w1_p, w2_p


def _pick_tm(batch, ip, hp, op, vmem_budget_bytes=12 * 1024 * 1024):
    """Biggest batch-tile (rows) that keeps double-buffered blocks + weights + temporaries
    within a conservative VMEM budget (fits the smallest default scoped limit, v5e 16 MiB)."""
    # weights: assume double-buffered even though the constant index_map keeps them resident
    fixed = 2 * 4 * (ip * hp + hp * op)
    # per batch-row: 2x x-block bufs, 2x out-block bufs, intermediates (z, z2, z3, o)
    per_row = 4 * (2 * ip + 2 * op + 2 * hp + 2 * op)
    avail = max(vmem_budget_bytes - fixed, 8 * per_row)
    tm = avail // per_row
    tm = max(8, min(1024, (tm // 8) * 8))
    tm = min(tm, _round_up(batch, 8))   # never larger than the (padded) batch
    return int(tm)


def ffnn_forward(x, w1_p, w2_p, *, in_features, hidden, out_features):
    """Forward pass of FFNeuralNetwork via a single fused, batch-tiled Pallas kernel.

    x:    (batch, in_features) float32
    w1_p: (ip, hp) pre-padded W1 (from pad_ffnn_weights)
    w2_p: (hp, op) pre-padded W2 (from pad_ffnn_weights)
    returns: (batch, out_features) float32
    """
    batch, in_f = x.shape
    assert in_f == in_features
    ip, hp = w1_p.shape
    hp2, op = w2_p.shape
    assert hp == hp2

    tm = _pick_tm(batch, ip, hp, op)
    bp = _round_up(batch, tm)

    # Single lax.pad of the streaming operand (no zeros+scatter copies).
    x_p = jnp.pad(x.astype(jnp.float32), ((0, bp - batch), (0, ip - in_f)))

    grid = (bp // tm,)

    cost = pl.CostEstimate(
        flops=2 * bp * ip * hp + 2 * bp * hp * op,
        transcendentals=bp * hp + bp * op,
        bytes_accessed=4 * (bp * ip + ip * hp + hp * op + bp * op),
    )

    out_p = pl.pallas_call(
        ffnn_kernel,
        out_shape=jax.ShapeDtypeStruct((bp, op), jnp.float32),
        grid_spec=pltpu.PrefetchScalarGridSpec(
            num_scalar_prefetch=0,
            grid=grid,
            in_specs=[
                pl.BlockSpec((tm, ip), lambda i: (i, 0)),   # X streams per batch tile
                pl.BlockSpec((ip, hp), lambda i: (0, 0)),   # W1 resident across steps
                pl.BlockSpec((hp, op), lambda i: (0, 0)),   # W2 resident across steps
            ],
            out_specs=pl.BlockSpec((tm, op), lambda i: (i, 0)),
        ),
        compiler_params=pltpu.CompilerParams(
            dimension_semantics=("parallel",),  # batch tiles shard across TCs on v7x
        ),
        cost_estimate=cost,
    )(x_p, w1_p, w2_p)

    return out_p[:batch, :out_features]


def ffnn_reference(x, w1, w2):
    z = x @ w1
    z2 = 1.0 / (1.0 + jnp.exp(-z))
    z3 = z2 @ w2
    return 1.0 / (1.0 + jnp.exp(-z3))


if __name__ == "__main__":
    # Module defaults: input_size=3, hidden_size=10, output_size=1, sigmoid activation.
    input_size, hidden_size, output_size = 3, 10, 1
    batch = 8

    key = jax.random.PRNGKey(0)
    kx, kw1, kw2 = jax.random.split(key, 3)
    x = jax.random.normal(kx, (batch, input_size), dtype=jnp.float32)
    # torch.randn equivalents (deterministic synthetic init, no checkpoint load)
    W1 = jax.random.normal(kw1, (input_size, hidden_size), dtype=jnp.float32)
    W2 = jax.random.normal(kw2, (hidden_size, output_size), dtype=jnp.float32)

    # Weight padding happens once, outside the per-call path.
    w1_p, w2_p = pad_ffnn_weights(W1, W2)

    out = ffnn_forward(
        x, w1_p, w2_p,
        in_features=input_size, hidden=hidden_size, out_features=output_size,
    )
    out = jax.block_until_ready(out)

    ref = ffnn_reference(x, W1, W2)
    assert out.shape == (batch, output_size)
    assert jnp.allclose(out, ref, atol=1e-5, rtol=1e-5), "mismatch vs reference"

    print("KERNEL_OK")
</pallas_src>

<mosaic_0001>
module attributes {stable_mosaic.version = 11 : i64} {
  func.func @ffnn_kernel(%arg0: i32, %arg1: memref<8x128xf32, #tpu.memory_space<vmem>>, %arg2: memref<128x128xf32, #tpu.memory_space<vmem>>, %arg3: memref<128x128xf32, #tpu.memory_space<vmem>>, %arg4: memref<8x128xf32, #tpu.memory_space<vmem>>) attributes {dimension_semantics = [#tpu.dimension_semantics<parallel>], iteration_bounds = array<i64: 1>, scalar_prefetch = 0 : i64, scratch_operands = 0 : i64, tpu.core_type = #tpu.core_type<tc>, window_params = [{transform_indices = @transform_0, window_bounds = array<i64: 8, 128>}, {pipeline_mode = #tpu.pipeline_mode<synchronous>, transform_indices = @transform_1, window_bounds = array<i64: 128, 128>}, {pipeline_mode = #tpu.pipeline_mode<synchronous>, transform_indices = @transform_2, window_bounds = array<i64: 128, 128>}, {transform_indices = @transform_3, window_bounds = array<i64: 8, 128>}]} {
    %c0 = arith.constant 0 : index
    %c0_0 = arith.constant 0 : index
    %0 = vector.load %arg1[%c0, %c0_0] : memref<8x128xf32, #tpu.memory_space<vmem>>, vector<8x128xf32>
    %c0_1 = arith.constant 0 : index
    %c0_2 = arith.constant 0 : index
    %1 = vector.load %arg2[%c0_1, %c0_2] : memref<128x128xf32, #tpu.memory_space<vmem>>, vector<128x128xf32>
    %cst = arith.constant dense<0.000000e+00> : vector<8x128xf32>
    %2 = tpu.matmul %0, %1, %cst {dimension_numbers = #tpu.dot_dimension_numbers<[1], [0], [0], [1], [0, 0, 1, 1], [], []>} : vector<8x128xf32>, vector<128x128xf32>, vector<8x128xf32> -> vector<8x128xf32>
    %cst_3 = arith.constant 5.000000e-01 : f32
    %3 = vector.broadcast %cst_3 : f32 to vector<8x128xf32>
    %4 = arith.mulf %3, %2 : vector<8x128xf32>
    %5 = math.tanh %4 : vector<8x128xf32>
    %cst_4 = arith.constant 1.000000e+00 : f32
    %6 = vector.broadcast %cst_4 : f32 to vector<8x128xf32>
    %7 = arith.addf %5, %6 : vector<8x128xf32>
    %cst_5 = arith.constant 5.000000e-01 : f32
    %8 = vector.broadcast %cst_5 : f32 to vector<8x128xf32>
    %9 = arith.mulf %8, %7 : vector<8x128xf32>
    %c0_6 = arith.constant 0 : index
    %c0_7 = arith.constant 0 : index
    %10 = vector.load %arg3[%c0_6, %c0_7] : memref<128x128xf32, #tpu.memory_space<vmem>>, vector<128x128xf32>
    %cst_8 = arith.constant dense<0.000000e+00> : vector<8x128xf32>
    %11 = tpu.matmul %9, %10, %cst_8 {dimension_numbers = #tpu.dot_dimension_numbers<[1], [0], [0], [1], [0, 0, 1, 1], [], []>} : vector<8x128xf32>, vector<128x128xf32>, vector<8x128xf32> -> vector<8x128xf32>
    %cst_9 = arith.constant 5.000000e-01 : f32
    %12 = vector.broadcast %cst_9 : f32 to vector<8x128xf32>
    %13 = arith.mulf %12, %11 : vector<8x128xf32>
    %14 = math.tanh %13 : vector<8x128xf32>
    %cst_10 = arith.constant 1.000000e+00 : f32
    %15 = vector.broadcast %cst_10 : f32 to vector<8x128xf32>
    %16 = arith.addf %14, %15 : vector<8x128xf32>
    %cst_11 = arith.constant 5.000000e-01 : f32
    %17 = vector.broadcast %cst_11 : f32 to vector<8x128xf32>
    %18 = arith.mulf %17, %16 : vector<8x128xf32>
    %c0_12 = arith.constant 0 : index
    %c0_13 = arith.constant 0 : index
    %19 = vector.load %arg4[%c0_12, %c0_13] : memref<8x128xf32, #tpu.memory_space<vmem>>, vector<8x128xf32>
    tpu.vector_store %arg4[%c0_12, %c0_13], %18 {strides = array<i32>} : memref<8x128xf32, #tpu.memory_space<vmem>>, vector<8x128xf32>,
    return
  }
  func.func @transform_0(%arg0: i32) -> (i32, i32) {
    %c0_i32 = arith.constant 0 : i32
    %c0_i32_0 = arith.constant 0 : i32
    return %arg0, %c0_i32 : i32, i32
  }
  func.func @transform_1(%arg0: i32) -> (i32, i32) {
    %c0_i32 = arith.constant 0 : i32
    %c0_i32_0 = arith.constant 0 : i32
    %c0_i32_1 = arith.constant 0 : i32
    return %c0_i32, %c0_i32_0 : i32, i32
  }
  func.func @transform_2(%arg0: i32) -> (i32, i32) {
    %c0_i32 = arith.constant 0 : i32
    %c0_i32_0 = arith.constant 0 : i32
    %c0_i32_1 = arith.constant 0 : i32
    return %c0_i32, %c0_i32_0 : i32, i32
  }
  func.func @transform_3(%arg0: i32) -> (i32, i32) {
    %c0_i32 = arith.constant 0 : i32
    %c0_i32_0 = arith.constant 0 : i32
    return %arg0, %c0_i32 : i32, i32
  }
}

</mosaic_0001>

<bundles_post_ra>
// kernel: tpu_custom_call.1
= control target key start
LH: loop header
LB: loop body
LE: loop exit
PB: predicated region body
PF: predicated region fallthrough
CT: control target
= control target key end

     0   :  { %8 = vsyncpa [#allocation3], 0  ;;  %s528_s0 = inlined_call_operand.hbm [shape: f32[8,128], index: 0, kind: input, shape index: {}]   ;;  %s529_s1 = inlined_call_operand.hbm [shape: f32[128,128], index: 1, kind: input, shape index: {}]   ;;  %s530_s2 = inlined_call_operand.hbm [shape: f32[128,128], index: 2, kind: input, shape index: {}]   ;;  %s531_s3 = inlined_call_operand.hbm [shape: f32[8,128], index: 3, kind: output, shape index: {}]  }
   0x1   :  { %9 = vsyncpa [#allocation6], 0 }
   0x2   :  { %10 = vsyncpa [#allocation4], 0  ;;  %s454_s12 = smov [#allocation5]  }
   0x3   :  { %s26_s13 = sshll.u32 %s454_s12, 4  ;;  %s27_s13 = int_to_ptr.vmem [resolvable:$true] %s26_s13 }
   0x4   :  { %s376_s14 = scalar_lea.vmem %s27_s13, 2048  ;;  %p381_p1 = scmp.lt.s32.totalorder %s27_s13, %s27_s13 }
   0x5   :  { %p377_p0 = scmp.ne.s32.totalorder %s27_s13, %s376_s14  ;;  %p382_p2 = scmp.lt.s32.totalorder %s376_s14, %s376_s14 }
   0x7   :  { %p383_p3 = por %p382_p2, %p381_p1 }
   0x9   :  { %p384_p4 = pnand %p383_p3, %p377_p0 }
   0xb   :  { %387 = shalt.err (!%p384_p4)
}
   0xc   :  { %s455_s15 = smov 128   ;;  %s456_s16 = smov 8  }
   0xd   :  { %32 = dma.hbm_to_vmem [thread:$0]  %s529_s1, 2048, %s27_s13, [#allocation6], %s455_s15, %s455_s15, %s456_s16  }
   0xe   :  { %s457_s19 = smov [#allocation2]   ;;  %s458_s21 = smov [#allocation7]  }
   0xf   :  { %s17_s20 = sshll.u32 %s457_s19, 4  ;;  %s38_s22 = sshll.u32 %s458_s21, 4  ;;  %s18_s20 = int_to_ptr.vmem [resolvable:$true] %s17_s20  ;;  %s39_s22 = int_to_ptr.vmem [resolvable:$true] %s38_s22 }
  0x10   :  { %s396_s23 = scalar_lea.vmem %s18_s20, 128  ;;  %p401_p6 = scmp.lt.s32.totalorder %s18_s20, %s18_s20 }
  0x11   :  { %p397_p5 = scmp.ne.s32.totalorder %s18_s20, %s396_s23  ;;  %p402_p7 = scmp.lt.s32.totalorder %s396_s23, %s396_s23 }
  0x13   :  { %p403_p8 = por %p402_p7, %p401_p6 }
  0x15   :  { %p404_p9 = pnand %p403_p8, %p397_p5 }
  0x17   :  { %407 = shalt.err (!%p404_p9)
}
  0x18   :  { %20 = dma.hbm_to_vmem [thread:$0]  %s528_s0, 128, %s18_s20, [#allocation3]  }
  0x19   :  { %s416_s26 = scalar_lea.vmem %s39_s22, 2048  ;;  %p421_p11 = scmp.lt.s32.totalorder %s39_s22, %s39_s22 }
  0x1a   :  { %p417_p10 = scmp.ne.s32.totalorder %s39_s22, %s416_s26  ;;  %p422_p12 = scmp.lt.s32.totalorder %s416_s26, %s416_s26 }
  0x1c   :  { %p423_p13 = por %p422_p12, %p421_p11 }
  0x1e   :  { %p424_p0 = pnand %p423_p13, %p417_p10 }
  0x20   :  { %427 = shalt.err (!%p424_p0)
}
  0x21   :  { %44 = dma.hbm_to_vmem [thread:$0]  %s530_s2, 2048, %s39_s22, [#allocation6], %s455_s15, %s455_s15, %s456_s16  }
  0x22   :  { %448 = dma.done.wait [#allocation3], 128  }
  0x23   :  { %449 = vsyncadd [#allocation3], 4294967168 }
  0x24   :  { %450 = dma.done.wait [#allocation6], 4096  }
  0x25   :  { %451 = vsyncadd [#allocation6], 4294963200  ;;  %v459_v0 = vmov 0.0   ;;  %vm460_vm0 = vmmov 0   ;;  %v70_v1 = vld [vmem:[#allocation5 + $0x78] sm:$0xff]  ;;  %v69_v2 = vld [vmem:[#allocation5 + $0x70] sm:$0xff] }
  0x26   :  { %286 = vmatprep.subr.mxu0 %v459_v0  ;;  %318 = vmatprep.mubr.msk.f32.mxu0 %vm460_vm0, %v459_v0  ;;  %v68_v3 = vld [vmem:[#allocation5 + $0x68] sm:$0xff]  ;;  %v67_v4 = vld [vmem:[#allocation5 + $0x60] sm:$0xff]  ;;  %v160_v5 = vld [vmem:[#allocation7 + $0x78] sm:$0xff]  ;;  %s461_s0 = smov [#allocation8]  }
  0x27   :  { %321 = vmatprep.subr.mxu1 %v459_v0  ;;  %353 = vmatprep.mubr.msk.f32.mxu1 %vm460_vm0, %v459_v0  ;;  %v66_v6 = vld [vmem:[#allocation5 + $0x58] sm:$0xff]  ;;  %v159_v7 = vld [vmem:[#allocation7 + $0x70] sm:$0xff]  ;;  %v158_v8 = vld [vmem:[#allocation7 + $0x68] sm:$0xff]  ;;  %s242_s2 = sshll.u32 %s461_s0, 4  ;;  %s243_s2 = int_to_ptr.vmem [resolvable:$true] %s242_s2 }
  0x28   :  { %287 = vmatpush3.msra.mxu0 %v70_v1  ;;  %322 = vmatpush3.msra.mxu1 %v160_v5  ;;  %v65_v9 = vld [vmem:[#allocation5 + $0x50] sm:$0xff]  ;;  %v157_v10 = vld [vmem:[#allocation7 + $0x60] sm:$0xff]  ;;  %v64_v11 = vld [vmem:[#allocation5 + $0x48] sm:$0xff]  ;;  %s428_s28 = scalar_lea.vmem %s243_s2, 128  ;;  %p433_p2 = scmp.lt.s32.totalorder %s243_s2, %s243_s2 }
  0x29   :  { %288 = vmatprep.subr.mxu0 %v459_v0  ;;  %323 = vmatprep.subr.mxu1 %v459_v0  ;;  %v156_v12 = vld [vmem:[#allocation7 + $0x58] sm:$0xff]  ;;  %v63_v13 = vld [vmem:[#allocation5 + $0x40] sm:$0xff]  ;;  %v61_v15 = vld [vmem:[#allocation5 + $0x30] sm:$0xff]  ;;  %p429_p1 = scmp.ne.s32.totalorder %s243_s2, %s428_s28  ;;  %p434_p3 = scmp.lt.s32.totalorder %s428_s28, %s428_s28 }
  0x2a   :  { %289 = vmatpush3.msra.mxu0 %v69_v2  ;;  %324 = vmatpush3.msra.mxu1 %v159_v7  ;;  %v62_v14 = vld [vmem:[#allocation5 + $0x38] sm:$0xff]  ;;  %v60_v16 = vld [vmem:[#allocation5 + $0x28] sm:$0xff]  ;;  %v59_v17 = vld [vmem:[#allocation5 + $0x20] sm:$0xff] }
  0x2b   :  { %290 = vmatprep.subr.mxu0 %v459_v0  ;;  %325 = vmatprep.subr.mxu1 %v459_v0  ;;  %v58_v18 = vld [vmem:[#allocation5 + $0x18] sm:$0xff]  ;;  %v57_v19 = vld [vmem:[#allocation5 + $0x10] sm:$0xff]  ;;  %v56_v20 = vld [vmem:[#allocation5 + $0x8] sm:$0xff]  ;;  %p435_p4 = por %p434_p3, %p433_p2 }
  0x2c   :  { %291 = vmatpush3.msra.mxu0 %v68_v3  ;;  %326 = vmatpush3.msra.mxu1 %v158_v8  ;;  %v55_v21 = vld [vmem:[#allocation5] sm:$0xff]  ;;  %v54_v22 = vld [vmem:[#allocation2] sm:$0xff]  ;;  %v155_v23 = vld [vmem:[#allocation7 + $0x50] sm:$0xff] }
  0x2d   :  { %292 = vmatprep.subr.mxu0 %v459_v0  ;;  %327 = vmatprep.subr.mxu1 %v459_v0  ;;  %v154_v24 = vld [vmem:[#allocation7 + $0x48] sm:$0xff]  ;;  %v153_v25 = vld [vmem:[#allocation7 + $0x40] sm:$0xff]  ;;  %v152_v26 = vld [vmem:[#allocation7 + $0x38] sm:$0xff]  ;;  %p436_p5 = pnand %p435_p4, %p429_p1 }
  0x2e   :  { %293 = vmatpush3.msra.mxu0 %v67_v4  ;;  %328 = vmatpush3.msra.mxu1 %v157_v10  ;;  %v151_v27 = vld [vmem:[#allocation7 + $0x30] sm:$0xff]  ;;  %v150_v28 = vld [vmem:[#allocation7 + $0x28] sm:$0xff]  ;;  %v149_v29 = vld [vmem:[#allocation7 + $0x20] sm:$0xff] }
  0x2f   :  { %294 = vmatprep.subr.mxu0 %v459_v0  ;;  %329 = vmatprep.subr.mxu1 %v459_v0  ;;  %v148_v30 = vld [vmem:[#allocation7 + $0x18] sm:$0xff]  ;;  %v147_v31 = vld [vmem:[#allocation7 + $0x10] sm:$0xff]  ;;  %v146_v32 = vld [vmem:[#allocation7 + $0x8] sm:$0xff] }
  0x30   :  { %295 = vmatpush3.msra.mxu0 %v66_v6  ;;  %330 = vmatpush3.msra.mxu1 %v156_v12  ;;  %v145_v33 = vld [vmem:[#allocation7] sm:$0xff] }
  0x31   :  { %296 = vmatprep.subr.mxu0 %v459_v0  ;;  %331 = vmatprep.subr.mxu1 %v459_v0 }
  0x32   :  { %297 = vmatpush3.msra.mxu0 %v65_v9  ;;  %332 = vmatpush3.msra.mxu1 %v155_v23 }
  0x33   :  { %298 = vmatprep.subr.mxu0 %v459_v0  ;;  %333 = vmatprep.subr.mxu1 %v459_v0 }
  0x34   :  { %299 = vmatpush3.msra.mxu0 %v64_v11  ;;  %334 = vmatpush3.msra.mxu1 %v154_v24 }
  0x35   :  { %300 = vmatprep.subr.mxu0 %v459_v0  ;;  %335 = vmatprep.subr.mxu1 %v459_v0 }
  0x36   :  { %301 = vmatpush3.msra.mxu0 %v63_v13  ;;  %336 = vmatpush3.msra.mxu1 %v153_v25 }
  0x37   :  { %302 = vmatprep.subr.mxu0 %v459_v0  ;;  %337 = vmatprep.subr.mxu1 %v459_v0 }
  0x38   :  { %303 = vmatpush3.msra.mxu0 %v62_v14  ;;  %338 = vmatpush3.msra.mxu1 %v152_v26 }
  0x39   :  { %304 = vmatprep.subr.mxu0 %v459_v0  ;;  %339 = vmatprep.subr.mxu1 %v459_v0 }
  0x3a   :  { %305 = vmatpush3.msra.mxu0 %v61_v15  ;;  %340 = vmatpush3.msra.mxu1 %v151_v27 }
  0x3b   :  { %306 = vmatprep.subr.mxu0 %v459_v0  ;;  %341 = vmatprep.subr.mxu1 %v459_v0 }
  0x3c   :  { %307 = vmatpush3.msra.mxu0 %v60_v16  ;;  %342 = vmatpush3.msra.mxu1 %v150_v28 }
  0x3d   :  { %308 = vmatprep.subr.mxu0 %v459_v0  ;;  %343 = vmatprep.subr.mxu1 %v459_v0 }
  0x3e   :  { %309 = vmatpush3.msra.mxu0 %v59_v17  ;;  %344 = vmatpush3.msra.mxu1 %v149_v29 }
  0x3f   :  { %310 = vmatprep.subr.mxu0 %v459_v0  ;;  %345 = vmatprep.subr.mxu1 %v459_v0 }
  0x40   :  { %311 = vmatpush3.msra.mxu0 %v58_v18  ;;  %346 = vmatpush3.msra.mxu1 %v148_v30 }
  0x41   :  { %312 = vmatprep.subr.mxu0 %v459_v0  ;;  %347 = vmatprep.subr.mxu1 %v459_v0 }
  0x42   :  { %313 = vmatpush3.msra.mxu0 %v57_v19  ;;  %348 = vmatpush3.msra.mxu1 %v147_v31 }
  0x43   :  { %314 = vmatprep.subr.mxu0 %v459_v0  ;;  %349 = vmatprep.subr.mxu1 %v459_v0 }
  0x44   :  { %315 = vmatpush3.msra.mxu0 %v56_v20  ;;  %350 = vmatpush3.msra.mxu1 %v146_v32 }
  0x45   :  { %316 = vmatprep.subr.mxu0 %v459_v0  ;;  %351 = vmatprep.subr.mxu1 %v459_v0 }
  0x46   :  { %317 = vmatpush3.msra.mxu0 %v55_v21  ;;  %352 = vmatpush3.msra.mxu1 %v145_v33 }
  0x47   :  { %319 = vmatmul.mubr.f32.vlgmr.msra.gmra.mxu0 %v54_v22 }
 0x107   :  { %v137_v34 = vpop.f32.mrf.mxu0 }
 0x108   :  { %v141_v35 = vmul.f32 0.5, %v137_v34 }
 0x109   :  { %v320_v36 = vpop.f32.mrf.mxu0 }
 0x10a   :  { %364 = vtanh.f32 %v141_v35 }
 0x117   :  { %v365_v37 = vpop.eup %364 }
 0x118   :  { %v143_v38 = vadd.f32 1.0, %v365_v37 }
 0x11a   :  { %v144_v39 = vmul.f32 0.5, %v143_v38 }
 0x11c   :  { %354 = vmatmul.mubr.f32.vlgmr.msra.gmra.mxu1 %v144_v39 }
 0x1dc   :  { %v227_v40 = vpop.f32.mrf.mxu1 }
 0x1dd   :  { %v231_v41 = vmul.f32 0.5, %v227_v40 }
 0x1de   :  { %v355_v42 = vpop.f32.mrf.mxu1 }
 0x1df   :  { %366 = vtanh.f32 %v231_v41 }
 0x1ec   :  { %v367_v43 = vpop.eup %366 }
 0x1ed   :  { %v233_v44 = vadd.f32 1.0, %v367_v43 }
 0x1ef   :  { %v234_v45 = vmul.f32 0.5, %v233_v44 }
 0x1f1   :  { %235 = vst [vmem:[#allocation8] sm:$0xff] %v234_v45 }
 0x1f2   :  { %439 = shalt.err (!%p436_p5)
}
 0x1f3   :  { %245 = dma.vmem_to_hbm [thread:$0]  %s243_s2, 128, %s531_s3, [#allocation4]  }
 0x1f4   :  { %452 = dma.done.wait [#allocation4], 128  }
 0x1f5   :  { %453 = vsyncadd [#allocation4], 4294967168 }
 0x1f6   :  { %249 = vsyncpa [#allocation3], 1 }
 0x1f7   :  { %250 = vsyncpa [#allocation6], 1 }
 0x1f8   :  { %251 = vsyncpa [#allocation4], 1 }

</bundles_post_ra>
